<compile_context>
chip_gen: v7x
topology: tpu7x:2x2x1
jax: 0.10.0
libtpu: 0.0.40
codegen_flags: <defaults>
</compile_context>

<pallas_src>
import jax
import jax.numpy as jnp
from jax.experimental import pallas as pl
from jax.experimental.pallas import tpu as pltpu

NUM_LODS = 8          # stand-in for len(LOD_NAMES) (unknown at kernel-authoring time)
HIDDEN = 128
IN_FEATURES = 3
OUT_PAD = 128         # padded layer-3 width used only inside the kernel (MXU shape)


def _round_up(n, m):
    return ((n + m - 1) // m) * m


def mlp_kernel(x_ref, w1_ref, b1_ref, w2_ref, b2_ref, w3_ref, b3_ref, o_ref):
    # x_ref: (TB, 3) f32        w1: (3, 128) f32        b1: (1, 128) f32
    # w2: (128, 128) bf16       b2: (1, 128) f32
    # w3: (128, 128) bf16 (zero-padded cols >= NUM_LODS)
    # b3: (1, 128) f32  (zero-padded)
    # o_ref: (TB, NUM_LODS) f32   <- narrow HBM writeback
    x = x_ref[...]                      # (TB, 3) f32
    w1 = w1_ref[...]                    # (3, 128) f32

    # ---- Layer 1: K=3 contraction as 3 VPU broadcast-FMAs (skip the MXU) ----
    h1 = (x[:, 0:1] * w1[0:1, :]
          + x[:, 1:2] * w1[1:2, :]
          + x[:, 2:3] * w1[2:3, :]
          + b1_ref[...])
    h1 = jnp.maximum(h1, 0.0)           # ReLU (Dropout: identity in eval), f32 epilogue

    # ---- Layer 2: bf16 MXU matmul, f32 accumulate, f32 epilogue ----
    h2 = jnp.dot(h1.astype(jnp.bfloat16), w2_ref[...],
                 preferred_element_type=jnp.float32) + b2_ref[...]
    h2 = jnp.maximum(h2, 0.0)           # ReLU (Dropout: identity in eval)

    # ---- Layer 3 (MXU-shaped 128-wide matmul, narrow store) ----
    h3 = jnp.dot(h2.astype(jnp.bfloat16), w3_ref[...],
                 preferred_element_type=jnp.float32) + b3_ref[...]
    h3 = jnp.maximum(h3, 0.0)           # final ReLU
    o_ref[...] = h3[:, :NUM_LODS]       # store only the real columns


def prepare_params(params):
    """One-time preprocessing of PyTorch-layout params for the kernel.

    Hoisted out of mlp_forward so repeated inference calls pay no per-call
    transpose/cast/pad HLO cost.
    """
    w1 = params["w1"].T.astype(jnp.float32)             # (3, 128)   f32 (VPU path)
    w2 = params["w2"].T.astype(jnp.bfloat16)             # (128, 128) bf16 (MXU)
    w3 = jnp.pad(params["w3"].T.astype(jnp.bfloat16),    # (128, 128) bf16, zero-padded cols
                 ((0, 0), (0, OUT_PAD - NUM_LODS)))
    b1 = params["b1"].reshape(1, HIDDEN).astype(jnp.float32)
    b2 = params["b2"].reshape(1, HIDDEN).astype(jnp.float32)
    b3 = jnp.pad(params["b3"].reshape(1, NUM_LODS).astype(jnp.float32),
                 ((0, 0), (0, OUT_PAD - NUM_LODS)))
    prepared = {"w1": w1, "b1": b1, "w2": w2, "b2": b2, "w3": w3, "b3": b3}
    return jax.tree_util.tree_map(jnp.asarray, prepared)


def mlp_forward(x, prepared, *, tile_b=4096):
    """x: (B, 3) float32.  prepared: output of prepare_params().

    Returns (B, NUM_LODS) float32.
    """
    B, F = x.shape
    assert F == IN_FEATURES

    # Shrink the tile for small batches (avoid huge zero-padding) while keeping
    # it sublane-aligned; for large batches keep the big tile so per-step
    # overhead is amortized and the grid has multiple steps (v7x megacore).
    tile_b = max(8, (min(tile_b, _round_up(B, 8)) // 8) * 8)
    B_pad = _round_up(B, tile_b)
    if B_pad != B:
        x = jnp.pad(x, ((0, B_pad - B), (0, 0)))

    grid = (B_pad // tile_b,)

    # Weights/biases: full arrays, constant block index -> resident across grid.
    full = lambda shape: pl.BlockSpec(shape, lambda i: (0, 0))

    out = pl.pallas_call(
        mlp_kernel,
        out_shape=jax.ShapeDtypeStruct((B_pad, NUM_LODS), jnp.float32),
        grid_spec=pltpu.PrefetchScalarGridSpec(
            num_scalar_prefetch=0,
            grid=grid,
            in_specs=[
                pl.BlockSpec((tile_b, IN_FEATURES), lambda i: (i, 0)),   # x
                full((IN_FEATURES, HIDDEN)),                             # w1 (f32)
                full((1, HIDDEN)),                                       # b1
                full((HIDDEN, HIDDEN)),                                  # w2 (bf16)
                full((1, HIDDEN)),                                       # b2
                full((HIDDEN, OUT_PAD)),                                 # w3 (bf16, padded)
                full((1, OUT_PAD)),                                      # b3 (padded)
            ],
            out_specs=pl.BlockSpec((tile_b, NUM_LODS), lambda i: (i, 0)),
        ),
        compiler_params=pltpu.CompilerParams(
            dimension_semantics=("parallel",),
        ),
    )(x, prepared["w1"], prepared["b1"], prepared["w2"], prepared["b2"],
      prepared["w3"], prepared["b3"])

    # Drop batch padding (no-op when B is already tile-aligned).
    if B_pad != B:
        out = out[:B]
    return out


def init_params(key):
    """Deterministic init mimicking PyTorch Linear default (U(-1/sqrt(in), 1/sqrt(in)))."""
    ks = jax.random.split(key, 6)

    def linear(kw, kb, out_f, in_f):
        bound = 1.0 / jnp.sqrt(jnp.float32(in_f))
        w = jax.random.uniform(kw, (out_f, in_f), jnp.float32, -bound, bound)
        b = jax.random.uniform(kb, (out_f,), jnp.float32, -bound, bound)
        return w, b

    w1, b1 = linear(ks[0], ks[1], HIDDEN, IN_FEATURES)
    w2, b2 = linear(ks[2], ks[3], HIDDEN, HIDDEN)
    w3, b3 = linear(ks[4], ks[5], NUM_LODS, HIDDEN)
    return {"w1": w1, "b1": b1, "w2": w2, "b2": b2, "w3": w3, "b3": b3}


def reference_forward(x, params):
    """Plain-JAX f32 reference of the PyTorch forward (eval mode)."""
    h = jnp.maximum(x @ params["w1"].T + params["b1"], 0.0)
    h = jnp.maximum(h @ params["w2"].T + params["b2"], 0.0)
    h = jnp.maximum(h @ params["w3"].T + params["b3"], 0.0)
    return h


if __name__ == "__main__":
    key = jax.random.PRNGKey(0)
    k_params, k_x = jax.random.split(key)

    params = init_params(k_params)
    prepared = prepare_params(params)          # one-time preprocessing

    B = 16
    x = jax.random.normal(k_x, (B, IN_FEATURES), jnp.float32)

    out = mlp_forward(x, prepared)
    out = jax.block_until_ready(out)

    ref = reference_forward(x, params)
    assert out.shape == (B, NUM_LODS)
    # bf16 matmul operands (f32 accumulate) -> relaxed tolerance vs f32 reference.
    max_err = float(jnp.max(jnp.abs(out - ref)))
    assert jnp.allclose(out, ref, atol=5e-2, rtol=5e-2), f"mismatch vs reference (max_err={max_err})"

    print("KERNEL_OK")
</pallas_src>

<mosaic_0001>
module attributes {stable_mosaic.version = 11 : i64} {
  func.func @mlp_kernel(%arg0: i32, %arg1: memref<16x3xf32, #tpu.memory_space<vmem>>, %arg2: memref<3x128xf32, #tpu.memory_space<vmem>>, %arg3: memref<1x128xf32, #tpu.memory_space<vmem>>, %arg4: memref<128x128xbf16, #tpu.memory_space<vmem>>, %arg5: memref<1x128xf32, #tpu.memory_space<vmem>>, %arg6: memref<128x128xbf16, #tpu.memory_space<vmem>>, %arg7: memref<1x128xf32, #tpu.memory_space<vmem>>, %arg8: memref<16x8xf32, #tpu.memory_space<vmem>>) attributes {dimension_semantics = [#tpu.dimension_semantics<parallel>], iteration_bounds = array<i64: 1>, scalar_prefetch = 0 : i64, scratch_operands = 0 : i64, tpu.core_type = #tpu.core_type<tc>, window_params = [{transform_indices = @transform_0, window_bounds = array<i64: 16, 3>}, {pipeline_mode = #tpu.pipeline_mode<synchronous>, transform_indices = @transform_1, window_bounds = array<i64: 3, 128>}, {pipeline_mode = #tpu.pipeline_mode<synchronous>, transform_indices = @transform_2, window_bounds = array<i64: 1, 128>}, {pipeline_mode = #tpu.pipeline_mode<synchronous>, transform_indices = @transform_3, window_bounds = array<i64: 128, 128>}, {pipeline_mode = #tpu.pipeline_mode<synchronous>, transform_indices = @transform_4, window_bounds = array<i64: 1, 128>}, {pipeline_mode = #tpu.pipeline_mode<synchronous>, transform_indices = @transform_5, window_bounds = array<i64: 128, 128>}, {pipeline_mode = #tpu.pipeline_mode<synchronous>, transform_indices = @transform_6, window_bounds = array<i64: 1, 128>}, {transform_indices = @transform_7, window_bounds = array<i64: 16, 8>}]} {
    %c0 = arith.constant 0 : index
    %c0_0 = arith.constant 0 : index
    %0 = vector.load %arg1[%c0, %c0_0] : memref<16x3xf32, #tpu.memory_space<vmem>>, vector<16x3xf32>
    %c0_1 = arith.constant 0 : index
    %c0_2 = arith.constant 0 : index
    %1 = vector.load %arg2[%c0_1, %c0_2] : memref<3x128xf32, #tpu.memory_space<vmem>>, vector<3x128xf32>
    %2 = vector.extract_strided_slice %0 {offsets = [0, 0], sizes = [16, 1], strides = [1, 1]} : vector<16x3xf32> to vector<16x1xf32>
    %3 = vector.extract_strided_slice %1 {offsets = [0, 0], sizes = [1, 128], strides = [1, 1]} : vector<3x128xf32> to vector<1x128xf32>
    %4 = vector.broadcast %2 : vector<16x1xf32> to vector<16x128xf32>
    %5 = vector.broadcast %3 : vector<1x128xf32> to vector<16x128xf32>
    %6 = arith.mulf %4, %5 : vector<16x128xf32>
    %7 = vector.extract_strided_slice %0 {offsets = [0, 1], sizes = [16, 1], strides = [1, 1]} : vector<16x3xf32> to vector<16x1xf32>
    %8 = vector.extract_strided_slice %1 {offsets = [1, 0], sizes = [1, 128], strides = [1, 1]} : vector<3x128xf32> to vector<1x128xf32>
    %9 = vector.broadcast %7 : vector<16x1xf32> to vector<16x128xf32>
    %10 = vector.broadcast %8 : vector<1x128xf32> to vector<16x128xf32>
    %11 = arith.mulf %9, %10 : vector<16x128xf32>
    %12 = arith.addf %6, %11 : vector<16x128xf32>
    %13 = vector.extract_strided_slice %0 {offsets = [0, 2], sizes = [16, 1], strides = [1, 1]} : vector<16x3xf32> to vector<16x1xf32>
    %14 = vector.extract_strided_slice %1 {offsets = [2, 0], sizes = [1, 128], strides = [1, 1]} : vector<3x128xf32> to vector<1x128xf32>
    %15 = vector.broadcast %13 : vector<16x1xf32> to vector<16x128xf32>
    %16 = vector.broadcast %14 : vector<1x128xf32> to vector<16x128xf32>
    %17 = arith.mulf %15, %16 : vector<16x128xf32>
    %18 = arith.addf %12, %17 : vector<16x128xf32>
    %c0_3 = arith.constant 0 : index
    %c0_4 = arith.constant 0 : index
    %19 = vector.load %arg3[%c0_3, %c0_4] : memref<1x128xf32, #tpu.memory_space<vmem>>, vector<1x128xf32>
    %20 = vector.broadcast %19 : vector<1x128xf32> to vector<16x128xf32>
    %21 = arith.addf %18, %20 : vector<16x128xf32>
    %cst = arith.constant 0.000000e+00 : f32
    %22 = vector.broadcast %cst : f32 to vector<16x128xf32>
    %23 = arith.maximumf %21, %22 : vector<16x128xf32>
    %24 = arith.truncf %23 : vector<16x128xf32> to vector<16x128xbf16>
    %c0_5 = arith.constant 0 : index
    %c0_6 = arith.constant 0 : index
    %25 = vector.load %arg4[%c0_5, %c0_6] : memref<128x128xbf16, #tpu.memory_space<vmem>>, vector<128x128xbf16>
    %cst_7 = arith.constant dense<0.000000e+00> : vector<16x128xf32>
    %26 = tpu.matmul %24, %25, %cst_7 {dimension_numbers = #tpu.dot_dimension_numbers<[1], [0], [0], [1], [0, 0, 1, 1], [], []>} : vector<16x128xbf16>, vector<128x128xbf16>, vector<16x128xf32> -> vector<16x128xf32>
    %c0_8 = arith.constant 0 : index
    %c0_9 = arith.constant 0 : index
    %27 = vector.load %arg5[%c0_8, %c0_9] : memref<1x128xf32, #tpu.memory_space<vmem>>, vector<1x128xf32>
    %28 = vector.broadcast %27 : vector<1x128xf32> to vector<16x128xf32>
    %29 = arith.addf %26, %28 : vector<16x128xf32>
    %cst_10 = arith.constant 0.000000e+00 : f32
    %30 = vector.broadcast %cst_10 : f32 to vector<16x128xf32>
    %31 = arith.maximumf %29, %30 : vector<16x128xf32>
    %32 = arith.truncf %31 : vector<16x128xf32> to vector<16x128xbf16>
    %c0_11 = arith.constant 0 : index
    %c0_12 = arith.constant 0 : index
    %33 = vector.load %arg6[%c0_11, %c0_12] : memref<128x128xbf16, #tpu.memory_space<vmem>>, vector<128x128xbf16>
    %cst_13 = arith.constant dense<0.000000e+00> : vector<16x128xf32>
    %34 = tpu.matmul %32, %33, %cst_13 {dimension_numbers = #tpu.dot_dimension_numbers<[1], [0], [0], [1], [0, 0, 1, 1], [], []>} : vector<16x128xbf16>, vector<128x128xbf16>, vector<16x128xf32> -> vector<16x128xf32>
    %c0_14 = arith.constant 0 : index
    %c0_15 = arith.constant 0 : index
    %35 = vector.load %arg7[%c0_14, %c0_15] : memref<1x128xf32, #tpu.memory_space<vmem>>, vector<1x128xf32>
    %36 = vector.broadcast %35 : vector<1x128xf32> to vector<16x128xf32>
    %37 = arith.addf %34, %36 : vector<16x128xf32>
    %cst_16 = arith.constant 0.000000e+00 : f32
    %38 = vector.broadcast %cst_16 : f32 to vector<16x128xf32>
    %39 = arith.maximumf %37, %38 : vector<16x128xf32>
    %40 = vector.extract_strided_slice %39 {offsets = [0, 0], sizes = [16, 8], strides = [1, 1]} : vector<16x128xf32> to vector<16x8xf32>
    %c0_17 = arith.constant 0 : index
    %c0_18 = arith.constant 0 : index
    %41 = vector.load %arg8[%c0_17, %c0_18] : memref<16x8xf32, #tpu.memory_space<vmem>>, vector<16x8xf32>
    tpu.vector_store %arg8[%c0_17, %c0_18], %40 {strides = array<i32>} : memref<16x8xf32, #tpu.memory_space<vmem>>, vector<16x8xf32>,
    return
  }
  func.func @transform_0(%arg0: i32) -> (i32, i32) {
    %c0_i32 = arith.constant 0 : i32
    %c0_i32_0 = arith.constant 0 : i32
    return %arg0, %c0_i32 : i32, i32
  }
  func.func @transform_1(%arg0: i32) -> (i32, i32) {
    %c0_i32 = arith.constant 0 : i32
    %c0_i32_0 = arith.constant 0 : i32
    %c0_i32_1 = arith.constant 0 : i32
    return %c0_i32, %c0_i32_0 : i32, i32
  }
  func.func @transform_2(%arg0: i32) -> (i32, i32) {
    %c0_i32 = arith.constant 0 : i32
    %c0_i32_0 = arith.constant 0 : i32
    %c0_i32_1 = arith.constant 0 : i32
    return %c0_i32, %c0_i32_0 : i32, i32
  }
  func.func @transform_3(%arg0: i32) -> (i32, i32) {
    %c0_i32 = arith.constant 0 : i32
    %c0_i32_0 = arith.constant 0 : i32
    %c0_i32_1 = arith.constant 0 : i32
    return %c0_i32, %c0_i32_0 : i32, i32
  }
  func.func @transform_4(%arg0: i32) -> (i32, i32) {
    %c0_i32 = arith.constant 0 : i32
    %c0_i32_0 = arith.constant 0 : i32
    %c0_i32_1 = arith.constant 0 : i32
    return %c0_i32, %c0_i32_0 : i32, i32
  }
  func.func @transform_5(%arg0: i32) -> (i32, i32) {
    %c0_i32 = arith.constant 0 : i32
    %c0_i32_0 = arith.constant 0 : i32
    %c0_i32_1 = arith.constant 0 : i32
    return %c0_i32, %c0_i32_0 : i32, i32
  }
  func.func @transform_6(%arg0: i32) -> (i32, i32) {
    %c0_i32 = arith.constant 0 : i32
    %c0_i32_0 = arith.constant 0 : i32
    %c0_i32_1 = arith.constant 0 : i32
    return %c0_i32, %c0_i32_0 : i32, i32
  }
  func.func @transform_7(%arg0: i32) -> (i32, i32) {
    %c0_i32 = arith.constant 0 : i32
    %c0_i32_0 = arith.constant 0 : i32
    return %arg0, %c0_i32 : i32, i32
  }
}

</mosaic_0001>

<bundles_post_ra>
// kernel: tpu_custom_call.1
= control target key start
LH: loop header
LB: loop body
LE: loop exit
PB: predicated region body
PF: predicated region fallthrough
CT: control target
= control target key end

     0   :  { %12 = vsyncpa [#allocation3], 0  ;;  %s625_s0 = inlined_call_operand.vmem [shape: f32[16,3], index: 0, kind: input, shape index: {}]   ;;  %s626_s1 = inlined_call_operand.vmem [shape: f32[3,128], index: 1, kind: input, shape index: {}]   ;;  %s627_s2 = inlined_call_operand.vmem [shape: f32[1,128], index: 2, kind: input, shape index: {}]   ;;  %s628_s3 = inlined_call_operand.hbm [shape: bf16[128,128], index: 3, kind: input, shape index: {}]   ;;  %s629_s4 = inlined_call_operand.vmem [shape: f32[1,128], index: 4, kind: input, shape index: {}]   ;;  %s630_s5 = inlined_call_operand.hbm [shape: bf16[128,128], index: 5, kind: input, shape index: {}]   ;;  %s631_s6 = inlined_call_operand.vmem [shape: f32[1,128], index: 6, kind: input, shape index: {}]   ;;  %s632_s7 = inlined_call_operand.vmem [shape: f32[16,8], index: 7, kind: output, shape index: {}]  }
   0x1   :  { %13 = vsyncpa [#allocation5], 0  ;;  %s510_s24 = smov [#allocation2]   ;;  %s462_s28 = scalar_lea.hbm %s628_s3, 1024 }
   0x2   :  { %s25_s25 = sshll.u32 %s510_s24, 4  ;;  %p463_p0 = scmp.ne.s32.totalorder %s628_s3, %s462_s28  ;;  %s26_s25 = int_to_ptr.vmem [resolvable:$true] %s25_s25 }
   0x3   :  { %p466_p1 = scmp.lt.u32.totalorder %s462_s28, %s628_s3 }
   0x5   :  { %p468_p2 = pnand %p466_p1, %p463_p0 }
   0x7   :  { %471 = shalt.err (!%p468_p2)
}
   0x8   :  { %s472_s10 = scalar_lea.vmem %s26_s25, 1024  ;;  %p477_p4 = scmp.lt.s32.totalorder %s26_s25, %s26_s25 }
   0x9   :  { %p473_p3 = scmp.ne.s32.totalorder %s26_s25, %s472_s10  ;;  %p478_p5 = scmp.lt.s32.totalorder %s472_s10, %s472_s10 }
   0xb   :  { %p479_p6 = por %p478_p5, %p477_p4 }
   0xd   :  { %p480_p7 = pnand %p479_p6, %p473_p3 }
   0xf   :  { %483 = shalt.err (!%p480_p7)
}
  0x10   :  { %s511_s11 = smov 64   ;;  %s512_s12 = smov 4  }
  0x11   :  { %31 = dma.hbm_to_vmem [thread:$0]  %s628_s3, 1024, %s26_s25, [#allocation3], %s511_s11, %s511_s11, %s512_s12  }
  0x12   :  { %s513_s15 = smov [#allocation4]   ;;  %s484_s19 = scalar_lea.hbm %s630_s5, 1024 }
  0x13   :  { %s39_s16 = sshll.u32 %s513_s15, 4  ;;  %p485_p8 = scmp.ne.s32.totalorder %s630_s5, %s484_s19  ;;  %s40_s16 = int_to_ptr.vmem [resolvable:$true] %s39_s16 }
  0x14   :  { %p488_p9 = scmp.lt.u32.totalorder %s484_s19, %s630_s5 }
  0x16   :  { %p490_p10 = pnand %p488_p9, %p485_p8 }
  0x18   :  { %493 = shalt.err (!%p490_p10)
}
  0x19   :  { %s494_s24 = scalar_lea.vmem %s40_s16, 1024  ;;  %p499_p12 = scmp.lt.s32.totalorder %s40_s16, %s40_s16 }
  0x1a   :  { %p495_p11 = scmp.ne.s32.totalorder %s40_s16, %s494_s24  ;;  %p500_p13 = scmp.lt.s32.totalorder %s494_s24, %s494_s24 }
  0x1c   :  { %p501_p0 = por %p500_p13, %p499_p12 }
  0x1e   :  { %p502_p1 = pnand %p501_p0, %p495_p11 }
  0x20   :  { %505 = shalt.err (!%p502_p1)
}
  0x21   :  { %45 = dma.hbm_to_vmem [thread:$0]  %s630_s5, 1024, %s40_s16, [#allocation5], %s511_s11, %s511_s11, %s512_s12  }
  0x22   :  { %506 = dma.done.wait [#allocation3], 1024  }
  0x23   :  { %507 = vsyncadd [#allocation3], 4294966272 }
  0x24   :  { %508 = dma.done.wait [#allocation5], 1024  }
  0x25   :  { %509 = vsyncadd [#allocation5], 4294966272  ;;  %v514_v0 = vmov 1   ;;  %v515_v1 = vmov 0   ;;  %v516_v2 = vmov 0.0   ;;  %v55_v3 = vld [vmem:[%s625_s0] sm:$0xff]  ;;  %v68_v20 = vlaneseq }
  0x26   :  { %443 = vset.pattern.permute.xlu1 %v514_v0  ;;  %442 = vset.pattern.permute.xlu0 %v515_v1  ;;  %v446_v4 = vld [vmem:[#allocation2] sm:$0xff]   ;;  %v56_v5 = vld [vmem:[%s625_s0 + $0x8] sm:$0xff]  ;;  %v448_v7 = vld [vmem:[#allocation2 + $0x10] sm:$0xff]   ;;  %v517_v8 = vmov 2   ;;  %vm518_vm0 = vmmov 0   ;;  %vm347_vm1 = vcmask 64512  }
  0x27   :  { %393 = vmatprep.subr.bf16.mxu0 %v516_v2  ;;  %413 = vmatprep.subr.bf16.mxu1 %v516_v2  ;;  %v447_v6 = vld [vmem:[#allocation2 + $0x8] sm:$0xff]   ;;  %v449_v9 = vld [vmem:[#allocation2 + $0x18] sm:$0xff]   ;;  %v450_v10 = vld [vmem:[#allocation2 + $0x20] sm:$0xff]   ;;  %v69_v21 = vshrl.u32 %v68_v20, 7 }
  0x28   :  { %75 = vperm.xlu1 %443, %v55_v3   ;;  %60 = vperm.xlu0 %442, %v55_v3   ;;  %v451_v11 = vld [vmem:[#allocation2 + $0x28] sm:$0xff]   ;;  %v454_v12 = vld [vmem:[#allocation4] sm:$0xff]   ;;  %v452_v14 = vld [vmem:[#allocation2 + $0x30] sm:$0xff]  }
  0x29   :  { %394 = vmatpush3.bf16.msra.mxu0 %v446_v4  ;;  %409 = vmatprep.mubr.msk.bf16.mxu0 %vm518_vm0, %v516_v2  ;;  %v455_v13 = vld [vmem:[#allocation4 + $0x8] sm:$0xff]   ;;  %v456_v15 = vld [vmem:[#allocation4 + $0x10] sm:$0xff]   ;;  %v453_v16 = vld [vmem:[#allocation2 + $0x38] sm:$0xff]   ;;  %v84_v22 = vsub.s32 1, %v69_v21  ;;  %v70_v23 = vsub.s32 0, %v69_v21  ;;  %v100_v27 = vsub.s32 2, %v69_v21 }
  0x2a   :  { %395 = vmatprep.subr.bf16.mxu0 %v516_v2  ;;  %429 = vmatprep.mubr.msk.bf16.mxu1 %vm518_vm0, %v516_v2  ;;  %v457_v17 = vld [vmem:[#allocation4 + $0x18] sm:$0xff]   ;;  %v458_v18 = vld [vmem:[#allocation4 + $0x20] sm:$0xff]   ;;  %v459_v19 = vld [vmem:[#allocation4 + $0x28] sm:$0xff]  }
  0x2b   :  { %414 = vmatpush3.bf16.msra.mxu1 %v454_v12  ;;  %v57_v24 = vld [vmem:[%s626_s1] sm:$0x7]  ;;  %v460_v51 = vld [vmem:[#allocation4 + $0x30] sm:$0xff]   ;;  %v461_v52 = vld [vmem:[#allocation4 + $0x38] sm:$0xff]  }
  0x2c   :  { %79 = vperm.xlu1 %443, %v56_v5   ;;  %65 = vperm.xlu0 %442, %v56_v5   ;;  %v85_v28 = vrot.slane %v57_v24, %v84_v22  ;;  %v71_v29 = vrot.slane %v57_v24, %v70_v23  ;;  %v101_v32 = vrot.slane %v57_v24, %v100_v27  ;;  %v356_v43 = vld [vmem:[%s627_s2] ss:$0 sm:$0xff] }
  0x2d   :  { %396 = vmatpush3.bf16.msra.mxu0 %v447_v6  ;;  %415 = vmatprep.subr.bf16.mxu1 %v516_v2  ;;  %v357_v53 = vld [vmem:[%s629_s4] ss:$0 sm:$0xff] }
  0x2e   :  { %397 = vmatprep.subr.bf16.mxu0 %v516_v2  ;;  %v366_v63 = vld [vmem:[%s631_s6] ss:$0 sm:$0xff] }
  0x2f   :  { %416 = vmatpush3.bf16.msra.mxu1 %v455_v13 }
  0x30   :  { %445 = vset.pattern.permute.xlu1 %v517_v8  ;;  %444 = vset.pattern.permute.xlu0 %v517_v8 }
  0x31   :  { %95 = vperm.xlu1 %445, %v56_v5   ;;  %91 = vperm.xlu0 %444, %v55_v3  }
  0x32   :  { %398 = vmatpush3.bf16.msra.mxu0 %v448_v7  ;;  %417 = vmatprep.subr.bf16.mxu1 %v516_v2 }
  0x33   :  { %399 = vmatprep.subr.bf16.mxu0 %v516_v2  ;;  %418 = vmatpush3.bf16.msra.mxu1 %v456_v15 }
  0x34   :  { %419 = vmatprep.subr.bf16.mxu1 %v516_v2 }
  0x36   :  { %400 = vmatpush3.bf16.msra.mxu0 %v449_v9 }
  0x37   :  { %401 = vmatprep.subr.bf16.mxu0 %v516_v2  ;;  %420 = vmatpush3.bf16.msra.mxu1 %v457_v17 }
  0x38   :  { %421 = vmatprep.subr.bf16.mxu1 %v516_v2 }
  0x3a   :  { %402 = vmatpush3.bf16.msra.mxu0 %v450_v10 }
  0x3b   :  { %403 = vmatprep.subr.bf16.mxu0 %v516_v2  ;;  %422 = vmatpush3.bf16.msra.mxu1 %v458_v18 }
  0x3c   :  { %423 = vmatprep.subr.bf16.mxu1 %v516_v2 }
  0x3e   :  { %404 = vmatpush3.bf16.msra.mxu0 %v451_v11 }
  0x3f   :  { %405 = vmatprep.subr.bf16.mxu0 %v516_v2  ;;  %424 = vmatpush3.bf16.msra.mxu1 %v459_v19 }
  0x40   :  { %425 = vmatprep.subr.bf16.mxu1 %v516_v2 }
  0x42   :  { %406 = vmatpush3.bf16.msra.mxu0 %v452_v14 }
  0x43   :  { %407 = vmatprep.subr.bf16.mxu0 %v516_v2  ;;  %426 = vmatpush3.bf16.msra.mxu1 %v460_v51 }
  0x44   :  { %427 = vmatprep.subr.bf16.mxu1 %v516_v2 }
  0x46   :  { %408 = vmatpush3.bf16.msra.mxu0 %v453_v16 }
  0x47   :  { %428 = vmatpush3.bf16.msra.mxu1 %v461_v52 }
  0xa7   :  { %v76_v25 = vpop.permute.xlu1 %75  ;;  %v61_v26 = vpop.permute.xlu0 %60 }
  0xa8   :  { %v86_v33 = vmul.f32 %v85_v28, %v76_v25  ;;  %v72_v34 = vmul.f32 %v71_v29, %v61_v26 }
  0xaa   :  { %v88_v39 = vadd.f32 %v86_v33, %v72_v34 }
  0xab   :  { %v80_v30 = vpop.permute.xlu1 %79  ;;  %v66_v31 = vpop.permute.xlu0 %65 }
  0xac   :  { %v87_v35 = vmul.f32 %v85_v28, %v80_v30  ;;  %v73_v36 = vmul.f32 %v71_v29, %v66_v31 }
  0xae   :  { %v89_v40 = vadd.f32 %v87_v35, %v73_v36 }
  0xb0   :  { %v96_v37 = vpop.permute.xlu1 %95  ;;  %v92_v38 = vpop.permute.xlu0 %91 }
  0xb1   :  { %v103_v41 = vmul.f32 %v101_v32, %v96_v37  ;;  %v102_v42 = vmul.f32 %v101_v32, %v92_v38 }
  0xb3   :  { %v105_v44 = vadd.f32 %v103_v41, %v89_v40  ;;  %v104_v45 = vadd.f32 %v102_v42, %v88_v39 }
  0xb5   :  { %v114_v46 = vadd.f32 %v356_v43, %v105_v44  ;;  %v113_v47 = vadd.f32 %v356_v43, %v104_v45 }
  0xb7   :  { %v116_v48 = vmax.f32 %v114_v46, 0.0  ;;  %v115_v49 = vmax.f32 %v113_v47, 0.0 }
  0xb9   :  { %v117_v50 = vpack.c.bf16 %v116_v48, %v115_v49 }
  0xbb   :  { %410 = vmatmul.mubr.bf16.vlgmr.msra.gmra.mrb[0].mxu0 %v117_v50 }
 0x18e   :  { %v223_v54 = vpop.f32.mrb[0].mxu0 }
 0x18f   :  { %v224_v55 = vadd.f32 %v357_v53, %v223_v54  ;;  %v411_v56 = vpop.f32.mrb[1].mxu0 }
 0x190   :  { %v226_v57 = vpop.f32.mrb[2].mxu0 }
 0x191   :  { %v227_v58 = vadd.f32 %v357_v53, %v226_v57  ;;  %v412_v59 = vpop.f32.mrb[3].mxu0  ;;  %v230_v60 = vmax.f32 %v224_v55, 0.0 }
 0x193   :  { %v231_v61 = vmax.f32 %v227_v58, 0.0 }
 0x195   :  { %v232_v62 = vpack.c.bf16 %v231_v61, %v230_v60 }
 0x197   :  { %430 = vmatmul.mubr.bf16.vlgmr.msra.gmra.mrb[0].mxu1 %v232_v62 }
 0x26a   :  { %v338_v0 = vpop.f32.mrb[0].mxu1 }
 0x26b   :  { %v339_v1 = vadd.f32 %v366_v63, %v338_v0  ;;  %v431_v2 = vpop.f32.mrb[1].mxu1 }
 0x26c   :  { %v341_v3 = vpop.f32.mrb[2].mxu1 }
 0x26d   :  { %v345_v4 = vmax.f32 %v339_v1, 0.0  ;;  %v342_v5 = vadd.f32 %v366_v63, %v341_v3  ;;  %v432_v6 = vpop.f32.mrb[3].mxu1 }
 0x26f   :  { %348 = vst.msk [vmem:[%s632_s7] sm:$0xff] %vm347_vm1, %v345_v4  ;;  %v346_v7 = vmax.f32 %v342_v5, 0.0 }
 0x271   :  { %349 = vst.msk [vmem:[%s632_s7 + $0x8] sm:$0xff] %vm347_vm1, %v346_v7 }
 0x272   :  { %354 = vsyncpa [#allocation3], 1 }
 0x273   :  { %355 = vsyncpa [#allocation5], 1 }

</bundles_post_ra>
